<compile_context>
chip_gen: v6e
topology: v6e:2x2x1
jax: 0.10.0
libtpu: 0.0.40
codegen_flags: <defaults>
</compile_context>

<pallas_src>
import functools

import numpy as np
import jax
import jax.numpy as jnp
from jax.experimental import pallas as pl
from jax.experimental.pallas import tpu as pltpu


# ----------------------------------------------------------------------------- #
# Pallas kernels
# ----------------------------------------------------------------------------- #
def _block_kernel(xph_ref, mask_ref, w1_ref, b1_ref, w2_ref, b2_ref,
                  w3_ref, b3_ref, res_ref, o_ref, hid_ref, dw_ref,
                  *, s, PB, Ho, Wo):
    """One fused InvertedResidual block for a single image.

    xph_ref : (1, s*s, PA*PB, Cin)  phase-split, zero-padded input (bf16)
    mask    : (s*s, PA*PB, 1)       1.0 at real-image positions, 0.0 at dw padding
    w1/b1   : folded pw-expand (Cin, Chid) / (1, Chid)
    w2/b2   : folded depthwise  (9, Chid)  / (1, Chid)       (f32, VPU path)
    w3/b3   : folded pw-project (Chid, Cout) / (1, Cout)
    res     : (1, Ho*Wo, Cout)      identity / downsampled identity
    o       : (1, Ho*Wo, Cout)
    hid     : VMEM (s*s, PA*PB, Chid) f32 scratch  (expanded hidden, never in HBM)
    dw      : VMEM (Ho*Wo, Chid) f32 scratch       (depthwise output)
    """
    nph = s * s
    w1 = w1_ref[...]
    b1 = b1_ref[...]

    # 1) pointwise expand (1x1 conv, BN folded) + ReLU; zero dw-padding positions.
    for p in range(nph):
        xp = xph_ref[0, p]                                           # (PA*PB, Cin)
        h = jnp.dot(xp, w1, preferred_element_type=jnp.float32)
        h = jnp.maximum(h + b1, 0.0) * mask_ref[p]
        hid_ref[p] = h

    # 2) depthwise 3x3 (BN folded) + ReLU; stride is encoded in the phase layout.
    w2r = [w2_ref[k:k + 1, :] for k in range(9)]                     # (1, Chid) each
    b2 = b2_ref[...]
    for i in range(Ho):
        acc = jnp.zeros((Wo, b2.shape[1]), jnp.float32)
        for kh in range(3):
            for kw in range(3):
                p = (kh % s) * s + (kw % s)
                start = (i + kh // s) * PB + (kw // s)
                tap = hid_ref[p, start:start + Wo, :]                # (Wo, Chid)
                acc = acc + tap * w2r[kh * 3 + kw]
        dw_ref[i * Wo:(i + 1) * Wo, :] = jnp.maximum(acc + b2, 0.0)

    # 3) pointwise project (1x1 conv, BN folded) + residual add.
    y = jnp.dot(dw_ref[...].astype(w3_ref.dtype), w3_ref[...],
                preferred_element_type=jnp.float32) + b3_ref[...]
    y = y + res_ref[0].astype(jnp.float32)
    o_ref[0] = y.astype(o_ref.dtype)


def _mm_kernel(x_ref, w_ref, b_ref, o_ref, *, relu):
    """o = [relu](x @ w + b)  (used for the strided-block identity patch conv)."""
    y = jnp.dot(x_ref[...], w_ref[...], preferred_element_type=jnp.float32) + b_ref[...]
    if relu:
        y = jnp.maximum(y, 0.0)
    o_ref[...] = y.astype(o_ref.dtype)


def _head_kernel(x_ref, w1_ref, b1_ref, w2_ref, b2_ref, o_ref):
    """Both BYOL MLP heads fused: Linear+BN(folded)+ReLU -> block-diagonal Linear."""
    h = jnp.dot(x_ref[...], w1_ref[...], preferred_element_type=jnp.float32) + b1_ref[...]
    h = jnp.maximum(h, 0.0)
    y = jnp.dot(h.astype(w2_ref.dtype), w2_ref[...],
                preferred_element_type=jnp.float32) + b2_ref[...]
    o_ref[...] = y.astype(o_ref.dtype)


# ----------------------------------------------------------------------------- #
# Wrappers
# ----------------------------------------------------------------------------- #
def _phase_split(x_nhwc, s, PA, PB):
    """Pad by 1 and split into s*s stride-phases; each phase flattened to (PA*PB, C)."""
    N, H, W, C = x_nhwc.shape
    xp = jnp.pad(x_nhwc, ((0, 0), (1, 1), (1, 1), (0, 0)))
    phases = []
    for pr in range(s):
        for pc in range(s):
            sl = xp[:, pr::s, pc::s, :][:, :PA, :PB, :]
            pa, pb = sl.shape[1], sl.shape[2]
            if pa < PA or pb < PB:
                sl = jnp.pad(sl, ((0, 0), (0, PA - pa), (0, PB - pb), (0, 0)))
            phases.append(sl.reshape(N, PA * PB, C))
    return jnp.stack(phases, axis=1)                  # (N, s*s, PA*PB, C)


def _phase_mask(s, H, W, PA, PB):
    """1.0 where the phase position maps to a real image pixel, 0.0 at dw padding."""
    m = np.zeros((s * s, PA * PB, 1), np.float32)
    for pr in range(s):
        for pc in range(s):
            p = pr * s + pc
            for a in range(PA):
                r = a * s + pr
                if not (1 <= r <= H):
                    continue
                for b in range(PB):
                    c = b * s + pc
                    if 1 <= c <= W:
                        m[p, a * PB + b, 0] = 1.0
    return jnp.asarray(m)


def _patch_conv(x_nhwc, w, b, s):
    """Conv2d(kernel=s, stride=s, no padding) as one patch matmul (identity path)."""
    N, H, W, Cin = x_nhwc.shape
    Ho, Wo = H // s, W // s
    Cout = w.shape[1]
    patches = (x_nhwc.reshape(N, Ho, s, Wo, s, Cin)
               .transpose(0, 1, 3, 2, 4, 5)
               .reshape(N * Ho * Wo, s * s * Cin))
    M, K = patches.shape
    y = pl.pallas_call(
        functools.partial(_mm_kernel, relu=False),
        out_shape=jax.ShapeDtypeStruct((M, Cout), jnp.bfloat16),
        grid=(1,),
        in_specs=[pl.BlockSpec((M, K), lambda i: (0, 0)),
                  pl.BlockSpec((K, Cout), lambda i: (0, 0)),
                  pl.BlockSpec((1, Cout), lambda i: (0, 0))],
        out_specs=pl.BlockSpec((M, Cout), lambda i: (0, 0)),
    )(patches, w, b)
    return y.reshape(N, Ho * Wo, Cout)


def fused_block(x_nhwc, p):
    """One InvertedResidual block: single fused pallas_call over a (N,) grid."""
    N, H, W, Cin = x_nhwc.shape
    s = int(p["stride"])
    Chid = p["w1"].shape[1]
    Cout = p["w3"].shape[1]
    if s > 1:
        assert H % s == 0 and W % s == 0
    Ho = (H - 1) // s + 1
    Wo = (W - 1) // s + 1
    PA = Ho + (2 if s == 1 else 1)
    PB = Wo + (2 if s == 1 else 1)
    nph = s * s

    xph = _phase_split(x_nhwc, s, PA, PB)                      # (N, nph, PA*PB, Cin) bf16
    mask = _phase_mask(s, H, W, PA, PB)                        # (nph, PA*PB, 1) f32
    if s == 1:
        res = x_nhwc.reshape(N, H * W, Cin)                    # Cin == Cout here
    else:
        res = _patch_conv(x_nhwc, p["down_w"], p["down_b"], s)  # (N, Ho*Wo, Cout)

    kernel = functools.partial(_block_kernel, s=s, PB=PB, Ho=Ho, Wo=Wo)
    out = pl.pallas_call(
        kernel,
        out_shape=jax.ShapeDtypeStruct((N, Ho * Wo, Cout), jnp.bfloat16),
        grid=(N,),
        in_specs=[
            pl.BlockSpec((1, nph, PA * PB, Cin), lambda n: (n, 0, 0, 0)),
            pl.BlockSpec((nph, PA * PB, 1), lambda n: (0, 0, 0)),
            pl.BlockSpec((Cin, Chid), lambda n: (0, 0)),
            pl.BlockSpec((1, Chid), lambda n: (0, 0)),
            pl.BlockSpec((9, Chid), lambda n: (0, 0)),
            pl.BlockSpec((1, Chid), lambda n: (0, 0)),
            pl.BlockSpec((Chid, Cout), lambda n: (0, 0)),
            pl.BlockSpec((1, Cout), lambda n: (0, 0)),
            pl.BlockSpec((1, Ho * Wo, Cout), lambda n: (n, 0, 0)),
        ],
        out_specs=pl.BlockSpec((1, Ho * Wo, Cout), lambda n: (n, 0, 0)),
        scratch_shapes=[pltpu.VMEM((nph, PA * PB, Chid), jnp.float32),
                        pltpu.VMEM((Ho * Wo, Chid), jnp.float32)],
        compiler_params=pltpu.CompilerParams(dimension_semantics=("parallel",)),
    )(xph, mask, p["w1"], p["b1"], p["w2"], p["b2"], p["w3"], p["b3"], res)
    return out.reshape(N, Ho, Wo, Cout)


def heads_pallas(z_flat, hp):
    """Both BYOL heads in one kernel; returns (M, 2*latent) f32."""
    M, K = z_flat.shape
    N1 = hp["W1"].shape[1]
    N2 = hp["W2"].shape[1]
    return pl.pallas_call(
        _head_kernel,
        out_shape=jax.ShapeDtypeStruct((M, N2), jnp.float32),
        grid=(1,),
        in_specs=[pl.BlockSpec((M, K), lambda i: (0, 0)),
                  pl.BlockSpec((K, N1), lambda i: (0, 0)),
                  pl.BlockSpec((1, N1), lambda i: (0, 0)),
                  pl.BlockSpec((N1, N2), lambda i: (0, 0)),
                  pl.BlockSpec((1, N2), lambda i: (0, 0))],
        out_specs=pl.BlockSpec((M, N2), lambda i: (0, 0)),
    )(z_flat.astype(jnp.bfloat16), hp["W1"], hp["B1"], hp["W2"], hp["B2"])


def fus_res_encoder_forward(observation, folded):
    """observation: (T, B, C, H, W) with C = c * num_stacked_input (NCHW per frame)."""
    T, B, C, H, W = observation.shape
    if observation.dtype == jnp.uint8:
        img = observation.astype(jnp.float32) * (1.0 / 255)
    else:
        img = observation.astype(jnp.float32)
    x = img.astype(jnp.bfloat16).reshape(T * B, C, H, W).transpose(0, 2, 3, 1)  # NHWC
    for blk in folded["blocks"]:
        x = fused_block(x, blk)
    TB, Ho, Wo, Co = x.shape
    z_flat = x.reshape(TB, Ho * Wo * Co)          # NHWC flatten; head W1 rows pre-permuted
    heads = folded["heads"]
    latent = heads["latent"]
    hy = heads_pallas(z_flat, heads)              # (TB, 2*latent) f32
    z_spatial = hy[:, :latent]
    z_temporal = hy[:, latent:]
    z_nchw = x.astype(jnp.float32).transpose(0, 3, 1, 2)   # NCHW only for the returned z
    return (z_spatial.reshape(T, B, latent),
            z_temporal.reshape(T, B, latent),
            z_nchw.reshape(T, B, Co, Ho, Wo))


# ----------------------------------------------------------------------------- #
# Deterministic synthetic parameters (torch-like layout) + BN / layout folding
# ----------------------------------------------------------------------------- #
def _uniform(key, shape, bound):
    return jax.random.uniform(key, shape, jnp.float32, minval=-bound, maxval=bound)


def _make_bn(key, c):
    k1, k2, k3, k4 = jax.random.split(key, 4)
    gamma = jax.random.uniform(k1, (c,), jnp.float32, 0.8, 1.2)
    beta = jax.random.uniform(k2, (c,), jnp.float32, -0.1, 0.1)
    mean = jax.random.uniform(k3, (c,), jnp.float32, -0.1, 0.1)
    var = jax.random.uniform(k4, (c,), jnp.float32, 0.5, 1.5)
    scale = gamma / jnp.sqrt(var + 1e-5)
    shift = beta - mean * scale
    return scale, shift


def _make_block(key, in_c, out_c, stride, expand_ratio):
    hidden = int(round(in_c * expand_ratio))
    ks = jax.random.split(key, 11)
    p = {"stride": stride}
    b = 1.0 / np.sqrt(in_c)                       # pw expand, fan_in = in_c
    p["w1"] = _uniform(ks[0], (in_c, hidden), b)
    p["b1"] = _uniform(ks[1], (hidden,), b)
    p["bn1"] = _make_bn(ks[2], hidden)
    b = 1.0 / np.sqrt(9.0)                        # depthwise, fan_in = 3*3
    p["w2"] = _uniform(ks[3], (9, hidden), b)     # tap order kh*3+kw
    p["b2"] = _uniform(ks[4], (hidden,), b)
    p["bn2"] = _make_bn(ks[5], hidden)
    b = 1.0 / np.sqrt(hidden)                     # pw project, fan_in = hidden
    p["w3"] = _uniform(ks[6], (hidden, out_c), b)
    p["b3"] = _uniform(ks[7], (out_c,), b)
    p["bn3"] = _make_bn(ks[8], out_c)
    if stride != 1:                               # downsample: Conv2d(k=stride, s=stride)
        b = 1.0 / np.sqrt(in_c * stride * stride)
        p["down_w"] = _uniform(ks[9], (stride * stride * in_c, out_c), b)  # (kh,kw,cin)
        p["down_b"] = _uniform(ks[10], (out_c,), b)
    return p


def _make_head(key, in_dim, hidden, latent):
    ks = jax.random.split(key, 5)
    b = 1.0 / np.sqrt(in_dim)
    p = {"w1": _uniform(ks[0], (in_dim, hidden), b),
         "b1": _uniform(ks[1], (hidden,), b)}
    p["bn_scale"], p["bn_shift"] = _make_bn(ks[2], hidden)
    b = 1.0 / np.sqrt(hidden)
    p["w2"] = _uniform(ks[3], (hidden, latent), b)
    p["b2"] = _uniform(ks[4], (latent,), b)
    return p


def make_params(key, in_c, depths, strides, blocks_per_group, expand_ratio,
                conv_out_size, hidden_size, latent_size):
    chans = [in_c] + list(depths)
    n_blocks = len(depths) * blocks_per_group
    keys = jax.random.split(key, n_blocks + 2)
    ki = 0
    groups = []
    for g in range(len(depths)):
        blocks = []
        for j in range(blocks_per_group):
            b_in = chans[g] if j == 0 else chans[g + 1]
            stride = strides[g] if j == 0 else 1
            blocks.append(_make_block(keys[ki], b_in, chans[g + 1], stride, expand_ratio))
            ki += 1
        groups.append(blocks)
    spatial = _make_head(keys[ki], conv_out_size, hidden_size, latent_size)
    temporal = _make_head(keys[ki + 1], conv_out_size, hidden_size, latent_size)
    return {"conv": groups, "spatial_head": spatial, "temporal_head": temporal}


def _fold_block(p):
    """Fold eval-mode BN into conv weights/biases; cast MXU weights to bf16."""
    f = {"stride": p["stride"]}
    s1, h1 = p["bn1"]
    f["w1"] = (p["w1"] * s1[None, :]).astype(jnp.bfloat16)
    f["b1"] = (p["b1"] * s1 + h1).reshape(1, -1).astype(jnp.float32)
    s2, h2 = p["bn2"]
    f["w2"] = (p["w2"] * s2[None, :]).astype(jnp.float32)           # VPU path stays f32
    f["b2"] = (p["b2"] * s2 + h2).reshape(1, -1).astype(jnp.float32)
    s3, h3 = p["bn3"]
    f["w3"] = (p["w3"] * s3[None, :]).astype(jnp.bfloat16)
    f["b3"] = (p["b3"] * s3 + h3).reshape(1, -1).astype(jnp.float32)
    if p["stride"] != 1:
        f["down_w"] = p["down_w"].astype(jnp.bfloat16)
        f["down_b"] = p["down_b"].reshape(1, -1).astype(jnp.float32)
    return f


def _fold_heads(sp, tp, out_chw):
    """Fuse both heads: permute W1 rows to NHWC order, fold BN, block-diag second layer."""
    Co, Ho, Wo = out_chw
    hh, ww, cc = np.meshgrid(np.arange(Ho), np.arange(Wo), np.arange(Co), indexing="ij")
    perm = (cc * Ho * Wo + hh * Wo + ww).reshape(-1)    # NHWC flat pos -> NCHW flat index

    def fold_one(p):
        w1f = (p["w1"] * p["bn_scale"][None, :])[perm, :]
        b1f = p["b1"] * p["bn_scale"] + p["bn_shift"]
        return w1f, b1f

    w1s, b1s = fold_one(sp)
    w1t, b1t = fold_one(tp)
    hidden = w1s.shape[1]
    latent = sp["w2"].shape[1]
    W1 = jnp.concatenate([w1s, w1t], axis=1).astype(jnp.bfloat16)        # (K, 2*hidden)
    B1 = jnp.concatenate([b1s, b1t]).reshape(1, -1).astype(jnp.float32)
    W2 = jnp.zeros((2 * hidden, 2 * latent), jnp.float32)
    W2 = W2.at[:hidden, :latent].set(sp["w2"]).at[hidden:, latent:].set(tp["w2"])
    B2 = jnp.concatenate([sp["b2"], tp["b2"]]).reshape(1, -1).astype(jnp.float32)
    return {"W1": W1, "B1": B1, "W2": W2.astype(jnp.bfloat16), "B2": B2, "latent": latent}


def fold_params(params, out_chw):
    blocks = [_fold_block(b) for g in params["conv"] for b in g]
    heads = _fold_heads(params["spatial_head"], params["temporal_head"], out_chw)
    return {"blocks": blocks, "heads": heads}


# ----------------------------------------------------------------------------- #
if __name__ == "__main__":
    key = jax.random.PRNGKey(0)

    # Small-shape instantiation of FusResEncoderModel.
    image_shape = (3, 24, 24)           # (c, h, w) per frame
    num_stacked_input = 3               # conv input channels = 3 * 3 = 9
    res_depths = (16, 32, 32)
    downsampling_strides = (3, 2, 2)
    blocks_per_group = 2
    expand_ratio = 2
    hidden_sizes = 64
    latent_size = 32
    T, B = 2, 2

    c, h, w = image_shape
    in_c = c * num_stacked_input
    total_stride = int(np.prod(downsampling_strides))
    h_out, w_out = h // total_stride, w // total_stride
    conv_out_size = res_depths[-1] * h_out * w_out            # == model.output_size

    kp, ko = jax.random.split(key)
    params = make_params(kp, in_c, res_depths, downsampling_strides,
                         blocks_per_group, expand_ratio,
                         conv_out_size, hidden_sizes, latent_size)
    folded = fold_params(params, (res_depths[-1], h_out, w_out))

    observation = jax.random.randint(
        ko, (T, B, in_c, h, w), 0, 256, dtype=jnp.int32).astype(jnp.uint8)

    z_spatial, z_temporal, z = fus_res_encoder_forward(observation, folded)
    jax.block_until_ready((z_spatial, z_temporal, z))

    assert z_spatial.shape == (T, B, latent_size)
    assert z_temporal.shape == (T, B, latent_size)
    assert z.shape == (T, B, res_depths[-1], h_out, w_out)
    assert all(bool(jnp.all(jnp.isfinite(a))) for a in (z_spatial, z_temporal, z))
    print("KERNEL_OK")
</pallas_src>

<mosaic_0001>
module attributes {stable_mosaic.version = 11 : i64} {
  func.func @_mm_kernel(%arg0: i32, %arg1: memref<256x81xbf16, #tpu.memory_space<vmem>>, %arg2: memref<81x16xbf16, #tpu.memory_space<vmem>>, %arg3: memref<1x16xf32, #tpu.memory_space<vmem>>, %arg4: memref<256x16xbf16, #tpu.memory_space<vmem>>) attributes {dimension_semantics = [#tpu.dimension_semantics<arbitrary>], iteration_bounds = array<i64: 1>, scalar_prefetch = 0 : i64, scratch_operands = 0 : i64, tpu.core_type = #tpu.core_type<tc>, window_params = [{pipeline_mode = #tpu.pipeline_mode<synchronous>, transform_indices = @transform_0, window_bounds = array<i64: 256, 81>}, {pipeline_mode = #tpu.pipeline_mode<synchronous>, transform_indices = @transform_1, window_bounds = array<i64: 81, 16>}, {pipeline_mode = #tpu.pipeline_mode<synchronous>, transform_indices = @transform_2, window_bounds = array<i64: 1, 16>}, {pipeline_mode = #tpu.pipeline_mode<synchronous>, transform_indices = @transform_3, window_bounds = array<i64: 256, 16>}]} {
    %c0 = arith.constant 0 : index
    %c0_0 = arith.constant 0 : index
    %0 = vector.load %arg1[%c0, %c0_0] : memref<256x81xbf16, #tpu.memory_space<vmem>>, vector<256x81xbf16>
    %c0_1 = arith.constant 0 : index
    %c0_2 = arith.constant 0 : index
    %1 = vector.load %arg2[%c0_1, %c0_2] : memref<81x16xbf16, #tpu.memory_space<vmem>>, vector<81x16xbf16>
    %cst = arith.constant dense<0.000000e+00> : vector<256x16xf32>
    %2 = tpu.matmul %0, %1, %cst {dimension_numbers = #tpu.dot_dimension_numbers<[1], [0], [0], [1], [0, 0, 1, 1], [], []>} : vector<256x81xbf16>, vector<81x16xbf16>, vector<256x16xf32> -> vector<256x16xf32>
    %c0_3 = arith.constant 0 : index
    %c0_4 = arith.constant 0 : index
    %3 = vector.load %arg3[%c0_3, %c0_4] : memref<1x16xf32, #tpu.memory_space<vmem>>, vector<1x16xf32>
    %4 = vector.broadcast %3 : vector<1x16xf32> to vector<256x16xf32>
    %5 = arith.addf %2, %4 : vector<256x16xf32>
    %6 = arith.truncf %5 : vector<256x16xf32> to vector<256x16xbf16>
    %c0_5 = arith.constant 0 : index
    %c0_6 = arith.constant 0 : index
    %7 = vector.load %arg4[%c0_5, %c0_6] : memref<256x16xbf16, #tpu.memory_space<vmem>>, vector<256x16xbf16>
    tpu.vector_store %arg4[%c0_5, %c0_6], %6 {strides = array<i32>} : memref<256x16xbf16, #tpu.memory_space<vmem>>, vector<256x16xbf16>,
    return
  }
  func.func @transform_0(%arg0: i32) -> (i32, i32) {
    %c0_i32 = arith.constant 0 : i32
    %c0_i32_0 = arith.constant 0 : i32
    %c0_i32_1 = arith.constant 0 : i32
    return %c0_i32, %c0_i32_0 : i32, i32
  }
  func.func @transform_1(%arg0: i32) -> (i32, i32) {
    %c0_i32 = arith.constant 0 : i32
    %c0_i32_0 = arith.constant 0 : i32
    %c0_i32_1 = arith.constant 0 : i32
    return %c0_i32, %c0_i32_0 : i32, i32
  }
  func.func @transform_2(%arg0: i32) -> (i32, i32) {
    %c0_i32 = arith.constant 0 : i32
    %c0_i32_0 = arith.constant 0 : i32
    %c0_i32_1 = arith.constant 0 : i32
    return %c0_i32, %c0_i32_0 : i32, i32
  }
  func.func @transform_3(%arg0: i32) -> (i32, i32) {
    %c0_i32 = arith.constant 0 : i32
    %c0_i32_0 = arith.constant 0 : i32
    %c0_i32_1 = arith.constant 0 : i32
    return %c0_i32, %c0_i32_0 : i32, i32
  }
}

</mosaic_0001>

<bundles_post_ra>
// kernel: tpu_custom_call.1
= control target key start
LH: loop header
LB: loop body
LE: loop exit
PB: predicated region body
PF: predicated region fallthrough
CT: control target
= control target key end

     0   :  { %vm227_vm0 = vcmask 1040384   ;;  %v763_v1 = vmov 0   ;;  %vm178_vm1 = vcmask 662528   ;;  %vm522_vm2 = vcmask 125952   ;;  %s1031_s1 = inlined_call_operand.vmem [shape: bf16[81,16], index: 1, kind: input, shape index: {}]   ;;  %s1032_s0 = inlined_call_operand.vmem [shape: bf16[256,81], index: 0, kind: input, shape index: {}]   ;;  %s1033_s2 = inlined_call_operand.vmem [shape: f32[1,16], index: 2, kind: input, shape index: {}]   ;;  %s1034_s3 = inlined_call_operand.vmem [shape: bf16[256,16], index: 3, kind: output, shape index: {}]  }
   0x1   :  { %v741_v0 = vld [vmem:[%s1031_s1 + $0x28] ss:$0 sps:$4 sm:$0x11]   ;;  %v229_v2 = vsel %vm227_vm0, 65535, %v763_v1  ;;  %v742_v4 = vld [vmem:[%s1031_s1 + $0x20] sm:$0xff]   ;;  %v743_v5 = vld [vmem:[%s1031_s1 + $0x18] sm:$0xff]  }
   0x2   :  { %v231_v3 = vand.u32 %v741_v0, %v229_v2  ;;  %v747_v6 = vld [vmem:[%s1032_s0] sm:$0xff]   ;;  %v744_v8 = vld [vmem:[%s1031_s1 + $0x10] sm:$0xff]   ;;  %v745_v9 = vld [vmem:[%s1031_s1 + $0x8] sm:$0xff]  }
   0x3   :  { %v748_v7 = vld [vmem:[%s1032_s0 + $0x40] sm:$0xff]   ;;  %696 = vmatprep.mubr.msk.bf16.mxu0 %vm178_vm1, %v747_v6  ;;  %v749_v11 = vld [vmem:[%s1032_s0 + $0x8] sm:$0xff]   ;;  %v751_v13 = vld [vmem:[%s1032_s0 + $0x10] sm:$0xff]  }
   0x4   :  { %684 = vmatprep.subr.bf16.mxu0 %v231_v3  ;;  %728 = vmatprep.subr.bf16.mxu1 %v231_v3  ;;  %v746_v10 = vld [vmem:[%s1031_s1] sm:$0xff]   ;;  %v750_v12 = vld [vmem:[%s1032_s0 + $0x48] sm:$0xff]   ;;  %v752_v14 = vld [vmem:[%s1032_s0 + $0x50] sm:$0xff]  }
   0x5   :  { %685 = vmatpush3.bf16.msra.mxu0 %v231_v3  ;;  %734 = vmatpush3.bf16.msra.mxu1 %v231_v3  ;;  %v753_v15 = vld [vmem:[%s1032_s0 + $0x18] sm:$0xff]   ;;  %v755_v17 = vld [vmem:[%s1032_s0 + $0x20] sm:$0xff]   ;;  %v757_v19 = vld [vmem:[%s1032_s0 + $0x28] sm:$0xff]  }
   0x6   :  { %686 = vmatprep.subr.bf16.mxu0 %v742_v4  ;;  %729 = vmatprep.subr.bf16.mxu1 %v742_v4  ;;  %v754_v16 = vld [vmem:[%s1032_s0 + $0x58] sm:$0xff]   ;;  %v756_v18 = vld [vmem:[%s1032_s0 + $0x60] sm:$0xff]   ;;  %v758_v20 = vld [vmem:[%s1032_s0 + $0x68] sm:$0xff]  }
   0x7   :  { %712 = vmatprep.mubr.msk.bf16.mxu1 %vm178_vm1, %v748_v7  ;;  %v759_v21 = vld [vmem:[%s1032_s0 + $0x30] sm:$0xff]   ;;  %v761_v23 = vld [vmem:[%s1032_s0 + $0x38] sm:$0xff]   ;;  %v869_v25 = vld [vmem:[%s1033_s2] ss:$0 sm:$0xff] }
   0x8   :  { %v760_v22 = vld [vmem:[%s1032_s0 + $0x70] sm:$0xff]   ;;  %v762_v24 = vld [vmem:[%s1032_s0 + $0x78] sm:$0xff]  }
   0x9   :  { %687 = vmatpush3.bf16.msra.mxu0 %v742_v4  ;;  %735 = vmatpush3.bf16.msra.mxu1 %v742_v4 }
   0xa   :  { %688 = vmatprep.subr.bf16.mxu0 %v743_v5  ;;  %730 = vmatprep.subr.bf16.mxu1 %v743_v5 }
   0xd   :  { %689 = vmatpush3.bf16.msra.mxu0 %v743_v5  ;;  %736 = vmatpush3.bf16.msra.mxu1 %v743_v5 }
   0xe   :  { %690 = vmatprep.subr.bf16.mxu0 %v744_v8  ;;  %731 = vmatprep.subr.bf16.mxu1 %v744_v8 }
  0x11   :  { %691 = vmatpush3.bf16.msra.mxu0 %v744_v8  ;;  %737 = vmatpush3.bf16.msra.mxu1 %v744_v8 }
  0x12   :  { %692 = vmatprep.subr.bf16.mxu0 %v745_v9  ;;  %732 = vmatprep.subr.bf16.mxu1 %v745_v9 }
  0x15   :  { %693 = vmatpush3.bf16.msra.mxu0 %v745_v9  ;;  %738 = vmatpush3.bf16.msra.mxu1 %v745_v9 }
  0x16   :  { %694 = vmatprep.subr.bf16.mxu0 %v746_v10  ;;  %733 = vmatprep.subr.bf16.mxu1 %v746_v10 }
  0x19   :  { %695 = vmatpush3.bf16.msra.mxu0 %v746_v10  ;;  %739 = vmatpush3.bf16.msra.mxu1 %v746_v10 }
  0x1c   :  { %697 = vmatmul.mubr.msk.bf16.vlgmr.msra.gmra.mxu0 %vm178_vm1, %v749_v11  ;;  %713 = vmatmul.mubr.msk.bf16.vlgmr.msra.gmra.mxu1 %vm178_vm1, %v750_v12 }
  0x1d   :  { %700 = vmatprep.mubr.msk.bf16.mxu0 %vm178_vm1, %v751_v13  ;;  %716 = vmatprep.mubr.msk.bf16.mxu1 %vm178_vm1, %v752_v14 }
  0x24   :  { %701 = vmatmul.mubr.msk.bf16.gmra.mxu0 %vm178_vm1, %v753_v15  ;;  %717 = vmatmul.mubr.msk.bf16.gmra.mxu1 %vm178_vm1, %v754_v16 }
  0x25   :  { %704 = vmatprep.mubr.msk.bf16.mxu0 %vm178_vm1, %v755_v17  ;;  %720 = vmatprep.mubr.msk.bf16.mxu1 %vm178_vm1, %v756_v18 }
  0x2c   :  { %705 = vmatmul.mubr.msk.bf16.gmra.mxu0 %vm178_vm1, %v757_v19  ;;  %721 = vmatmul.mubr.msk.bf16.gmra.mxu1 %vm178_vm1, %v758_v20 }
  0x2d   :  { %708 = vmatprep.mubr.msk.bf16.mxu0 %vm178_vm1, %v759_v21  ;;  %724 = vmatprep.mubr.msk.bf16.mxu1 %vm178_vm1, %v760_v22 }
  0x34   :  { %709 = vmatmul.mubr.msk.bf16.gmra.mxu0 %vm178_vm1, %v761_v23  ;;  %725 = vmatmul.mubr.msk.bf16.gmra.mxu1 %vm178_vm1, %v762_v24 }
  0xdc   :  { %v698_v26 = vpop.f32.mrf.mxu0  ;;  %v714_v27 = vpop.f32.mrf.mxu1 }
  0xdd   :  { %v276_v28 = vadd.f32 %v698_v26, %v869_v25  ;;  %v340_v29 = vadd.f32 %v714_v27, %v869_v25 }
  0xde   :  { %v267_v30 = vpop.f32.mrf.mxu0  ;;  %v331_v31 = vpop.f32.mrf.mxu1 }
  0xdf   :  { %v632_v32 = vpack.c.bf16 %v276_v28, %v276_v28  ;;  %v648_v33 = vpack.c.bf16 %v340_v29, %v340_v29  ;;  %v268_v34 = vadd.f32 %v869_v25, %v267_v30  ;;  %v332_v35 = vadd.f32 %v869_v25, %v331_v31 }
  0xe0   :  { %v699_v36 = vpop.f32.mrf.mxu0  ;;  %v715_v37 = vpop.f32.mrf.mxu1 }
  0xe1   :  { %525 = vst.msk [vmem:[%s1034_s3 + $0x8] sm:$0xf] %vm522_vm2, %v632_v32  ;;  %541 = vst.msk [vmem:[%s1034_s3 + $0x48] sm:$0xf] %vm522_vm2, %v648_v33  ;;  %v630_v38 = vpack.c.bf16 %v268_v34, %v268_v34  ;;  %v646_v39 = vpack.c.bf16 %v332_v35, %v332_v35  ;;  %v279_v40 = vadd.f32 %v699_v36, %v869_v25 }
  0xe2   :  { %v343_v41 = vadd.f32 %v715_v37, %v869_v25  ;;  %v270_v42 = vpop.f32.mrf.mxu0  ;;  %v334_v43 = vpop.f32.mrf.mxu1 }
  0xe3   :  { %523 = vst.msk [vmem:[%s1034_s3] sm:$0xf] %vm522_vm2, %v630_v38  ;;  %539 = vst.msk [vmem:[%s1034_s3 + $0x40] sm:$0xf] %vm522_vm2, %v646_v39  ;;  %v633_v44 = vpack.c.bf16 %v279_v40, %v279_v40  ;;  %v271_v46 = vadd.f32 %v869_v25, %v270_v42  ;;  %v335_v47 = vadd.f32 %v869_v25, %v334_v43 }
  0xe4   :  { %v649_v45 = vpack.c.bf16 %v343_v41, %v343_v41  ;;  %v702_v48 = vpop.f32.mrf.mxu0  ;;  %v718_v49 = vpop.f32.mrf.mxu1 }
  0xe5   :  { %526 = vst.msk [vmem:[%s1034_s3 + $0xc] sm:$0xf] %vm522_vm2, %v633_v44  ;;  %v631_v50 = vpack.c.bf16 %v271_v46, %v271_v46  ;;  %v647_v51 = vpack.c.bf16 %v335_v47, %v335_v47  ;;  %v292_v52 = vadd.f32 %v702_v48, %v869_v25  ;;  %v356_v53 = vadd.f32 %v718_v49, %v869_v25 }
  0xe6   :  { %542 = vst.msk [vmem:[%s1034_s3 + $0x4c] sm:$0xf] %vm522_vm2, %v649_v45  ;;  %v283_v54 = vpop.f32.mrf.mxu0  ;;  %v347_v55 = vpop.f32.mrf.mxu1 }
  0xe7   :  { %524 = vst.msk [vmem:[%s1034_s3 + $0x4] sm:$0xf] %vm522_vm2, %v631_v50  ;;  %540 = vst.msk [vmem:[%s1034_s3 + $0x44] sm:$0xf] %vm522_vm2, %v647_v51  ;;  %v636_v56 = vpack.c.bf16 %v292_v52, %v292_v52  ;;  %v652_v57 = vpack.c.bf16 %v356_v53, %v356_v53  ;;  %v284_v58 = vadd.f32 %v869_v25, %v283_v54 }
  0xe8   :  { %v348_v59 = vadd.f32 %v869_v25, %v347_v55  ;;  %v703_v60 = vpop.f32.mrf.mxu0  ;;  %v719_v61 = vpop.f32.mrf.mxu1 }
  0xe9   :  { %529 = vst.msk [vmem:[%s1034_s3 + $0x18] sm:$0xf] %vm522_vm2, %v636_v56  ;;  %545 = vst.msk [vmem:[%s1034_s3 + $0x58] sm:$0xf] %vm522_vm2, %v652_v57  ;;  %v634_v62 = vpack.c.bf16 %v284_v58, %v284_v58  ;;  %v295_v0 = vadd.f32 %v703_v60, %v869_v25  ;;  %v359_v1 = vadd.f32 %v719_v61, %v869_v25 }
  0xea   :  { %v650_v63 = vpack.c.bf16 %v348_v59, %v348_v59  ;;  %v286_v2 = vpop.f32.mrf.mxu0  ;;  %v350_v3 = vpop.f32.mrf.mxu1 }
  0xeb   :  { %527 = vst.msk [vmem:[%s1034_s3 + $0x10] sm:$0xf] %vm522_vm2, %v634_v62  ;;  %v637_v4 = vpack.c.bf16 %v295_v0, %v295_v0  ;;  %v653_v5 = vpack.c.bf16 %v359_v1, %v359_v1  ;;  %v287_v6 = vadd.f32 %v869_v25, %v286_v2  ;;  %v351_v7 = vadd.f32 %v869_v25, %v350_v3 }
  0xec   :  { %543 = vst.msk [vmem:[%s1034_s3 + $0x50] sm:$0xf] %vm522_vm2, %v650_v63  ;;  %v706_v8 = vpop.f32.mrf.mxu0  ;;  %v722_v9 = vpop.f32.mrf.mxu1 }
  0xed   :  { %530 = vst.msk [vmem:[%s1034_s3 + $0x1c] sm:$0xf] %vm522_vm2, %v637_v4  ;;  %546 = vst.msk [vmem:[%s1034_s3 + $0x5c] sm:$0xf] %vm522_vm2, %v653_v5  ;;  %v635_v10 = vpack.c.bf16 %v287_v6, %v287_v6  ;;  %v651_v11 = vpack.c.bf16 %v351_v7, %v351_v7  ;;  %v308_v12 = vadd.f32 %v706_v8, %v869_v25 }
  0xee   :  { %v372_v13 = vadd.f32 %v722_v9, %v869_v25  ;;  %v299_v14 = vpop.f32.mrf.mxu0  ;;  %v363_v15 = vpop.f32.mrf.mxu1 }
  0xef   :  { %528 = vst.msk [vmem:[%s1034_s3 + $0x14] sm:$0xf] %vm522_vm2, %v635_v10  ;;  %544 = vst.msk [vmem:[%s1034_s3 + $0x54] sm:$0xf] %vm522_vm2, %v651_v11  ;;  %v640_v16 = vpack.c.bf16 %v308_v12, %v308_v12  ;;  %v300_v18 = vadd.f32 %v869_v25, %v299_v14  ;;  %v364_v19 = vadd.f32 %v869_v25, %v363_v15 }
  0xf0   :  { %v656_v17 = vpack.c.bf16 %v372_v13, %v372_v13  ;;  %v707_v20 = vpop.f32.mrf.mxu0  ;;  %v723_v21 = vpop.f32.mrf.mxu1 }
  0xf1   :  { %533 = vst.msk [vmem:[%s1034_s3 + $0x28] sm:$0xf] %vm522_vm2, %v640_v16  ;;  %v638_v22 = vpack.c.bf16 %v300_v18, %v300_v18  ;;  %v654_v23 = vpack.c.bf16 %v364_v19, %v364_v19  ;;  %v311_v24 = vadd.f32 %v707_v20, %v869_v25  ;;  %v375_v26 = vadd.f32 %v723_v21, %v869_v25 }
  0xf2   :  { %549 = vst.msk [vmem:[%s1034_s3 + $0x68] sm:$0xf] %vm522_vm2, %v656_v17  ;;  %v302_v27 = vpop.f32.mrf.mxu0  ;;  %v366_v28 = vpop.f32.mrf.mxu1 }
  0xf3   :  { %531 = vst.msk [vmem:[%s1034_s3 + $0x20] sm:$0xf] %vm522_vm2, %v638_v22  ;;  %547 = vst.msk [vmem:[%s1034_s3 + $0x60] sm:$0xf] %vm522_vm2, %v654_v23  ;;  %v641_v29 = vpack.c.bf16 %v311_v24, %v311_v24  ;;  %v657_v30 = vpack.c.bf16 %v375_v26, %v375_v26  ;;  %v303_v31 = vadd.f32 %v869_v25, %v302_v27 }
  0xf4   :  { %v367_v32 = vadd.f32 %v869_v25, %v366_v28  ;;  %v710_v33 = vpop.f32.mrf.mxu0  ;;  %v726_v34 = vpop.f32.mrf.mxu1 }
  0xf5   :  { %534 = vst.msk [vmem:[%s1034_s3 + $0x2c] sm:$0xf] %vm522_vm2, %v641_v29  ;;  %550 = vst.msk [vmem:[%s1034_s3 + $0x6c] sm:$0xf] %vm522_vm2, %v657_v30  ;;  %v639_v35 = vpack.c.bf16 %v303_v31, %v303_v31  ;;  %v324_v37 = vadd.f32 %v710_v33, %v869_v25  ;;  %v388_v38 = vadd.f32 %v726_v34, %v869_v25 }
  0xf6   :  { %v655_v36 = vpack.c.bf16 %v367_v32, %v367_v32  ;;  %v315_v39 = vpop.f32.mrf.mxu0  ;;  %v379_v40 = vpop.f32.mrf.mxu1 }
  0xf7   :  { %532 = vst.msk [vmem:[%s1034_s3 + $0x24] sm:$0xf] %vm522_vm2, %v639_v35  ;;  %v644_v41 = vpack.c.bf16 %v324_v37, %v324_v37  ;;  %v660_v42 = vpack.c.bf16 %v388_v38, %v388_v38  ;;  %v316_v43 = vadd.f32 %v869_v25, %v315_v39  ;;  %v380_v44 = vadd.f32 %v869_v25, %v379_v40 }
  0xf8   :  { %548 = vst.msk [vmem:[%s1034_s3 + $0x64] sm:$0xf] %vm522_vm2, %v655_v36  ;;  %v711_v45 = vpop.f32.mrf.mxu0  ;;  %v727_v46 = vpop.f32.mrf.mxu1 }
  0xf9   :  { %537 = vst.msk [vmem:[%s1034_s3 + $0x38] sm:$0xf] %vm522_vm2, %v644_v41  ;;  %553 = vst.msk [vmem:[%s1034_s3 + $0x78] sm:$0xf] %vm522_vm2, %v660_v42  ;;  %v642_v47 = vpack.c.bf16 %v316_v43, %v316_v43  ;;  %v658_v48 = vpack.c.bf16 %v380_v44, %v380_v44  ;;  %v327_v49 = vadd.f32 %v711_v45, %v869_v25 }
  0xfa   :  { %v391_v50 = vadd.f32 %v727_v46, %v869_v25  ;;  %v318_v51 = vpop.f32.mrf.mxu0  ;;  %v382_v52 = vpop.f32.mrf.mxu1 }
  0xfb   :  { %535 = vst.msk [vmem:[%s1034_s3 + $0x30] sm:$0xf] %vm522_vm2, %v642_v47  ;;  %551 = vst.msk [vmem:[%s1034_s3 + $0x70] sm:$0xf] %vm522_vm2, %v658_v48  ;;  %v645_v53 = vpack.c.bf16 %v327_v49, %v327_v49  ;;  %v319_v55 = vadd.f32 %v869_v25, %v318_v51  ;;  %v383_v56 = vadd.f32 %v869_v25, %v382_v52 }
  0xfc   :  { %v661_v54 = vpack.c.bf16 %v391_v50, %v391_v50 }
  0xfd   :  { %538 = vst.msk [vmem:[%s1034_s3 + $0x3c] sm:$0xf] %vm522_vm2, %v645_v53  ;;  %v643_v57 = vpack.c.bf16 %v319_v55, %v319_v55  ;;  %v659_v58 = vpack.c.bf16 %v383_v56, %v383_v56 }
  0xfe   :  { %554 = vst.msk [vmem:[%s1034_s3 + $0x7c] sm:$0xf] %vm522_vm2, %v661_v54 }
  0xff   :  { %536 = vst.msk [vmem:[%s1034_s3 + $0x34] sm:$0xf] %vm522_vm2, %v643_v57  ;;  %552 = vst.msk [vmem:[%s1034_s3 + $0x74] sm:$0xf] %vm522_vm2, %v659_v58 }

</bundles_post_ra>
